<compile_context>
chip_gen: v5e
topology: v5e:2x2
jax: 0.10.0
libtpu: 0.0.40
codegen_flags: <defaults>
</compile_context>

<pallas_src>
import functools

import jax
import jax.numpy as jnp
from jax.experimental import pallas as pl
from jax.experimental.pallas import tpu as pltpu


def _round_up(v, m):
    return (v + m - 1) // m * m


def _patch_proj_kernel(p_ref, w_ref, bce_ref, o_ref, *, tc):
    # p_ref  : (TC, T, K)    bf16/f32 im2col patches of TC channel-images
    # w_ref  : (K, Dp)       flattened conv kernel (VMEM-resident: constant index_map)
    # bce_ref: (TC, 1, Dp)   fused per-(batch,channel) bias = conv_b + channel_embed (f32)
    # o_ref  : (TC, T, Dp)
    w = w_ref[...]
    # Static unroll: TC back-to-back MXU matmuls sharing the same RHS, so the
    # systolic weights are loaded once per grid step (equivalent to a single
    # (TC*T, K) @ (K, Dp) row-tiled matmul, without any in-kernel relayout).
    for c in range(tc):
        acc = jnp.dot(p_ref[c], w, preferred_element_type=jnp.float32)   # (T, Dp) f32
        o_ref[c] = (acc + bce_ref[c]).astype(o_ref.dtype)                # f32 bias add


def patch_embed_per_channel(x, conv_w, conv_b, channel_embed_w, cur_channels,
                            patch_size, *, matmul_dtype=jnp.bfloat16,
                            rows_per_step_target=1024):
    """x: (B, Cin, H, W). Returns (tokens (B, Cin*Hp*Wp, D), Cin, loss=0.0)."""
    B, Cin, H, W = x.shape
    P = patch_size
    Hp, Wp = H // P, W // P
    T = Hp * Wp                        # patches (tokens) per channel
    K = P * P                          # flattened patch length
    D = conv_w.shape[0]                # embed_dim; conv_w: (D, 1, 1, P, P)
    Dp = _round_up(D, 128)             # lane-dense output stores
    BC = B * Cin

    # --- glue (plain JAX): im2col, weight flatten, fused bias + channel embed ---
    # TODO(synk): the im2col transpose materializes a (BC, T, K) bf16 copy in HBM;
    # doing the (P,P) patch rearrangement inside the kernel needs a second-minor
    # relayout Mosaic does not lower cleanly, so it stays in the XLA wrapper.
    patches = x.reshape(B, Cin, Hp, P, Wp, P).transpose(0, 1, 2, 4, 3, 5)
    patches = patches.reshape(BC, T, K).astype(matmul_dtype)            # (BC, T, K)
    w_mat = conv_w.reshape(D, K).T.astype(matmul_dtype)                 # (K, D), k = p*P+q
    if Dp != D:
        w_mat = jnp.pad(w_mat, ((0, 0), (0, Dp - D)))                   # (K, Dp)
    bce = conv_b[None, :] + channel_embed_w[jnp.asarray(cur_channels)]  # (Cin, D) f32
    if Dp != D:
        bce = jnp.pad(bce, ((0, 0), (0, Dp - D)))
    bce = jnp.broadcast_to(bce[None], (B, Cin, Dp)).reshape(BC, 1, Dp)
    bce = bce.astype(jnp.float32)                                       # (BC, 1, Dp)

    # --- tile sizing: TC channel-images per grid step, sized for VMEM (v7x safe) ---
    in_bytes = jnp.dtype(matmul_dtype).itemsize
    out_bytes = jnp.dtype(x.dtype).itemsize
    tc = max(1, min(BC, rows_per_step_target // max(T, 1)))

    def _step_bytes(c):  # double-buffered in/out streams + resident weights
        return (2 * c * T * (K * in_bytes + Dp * out_bytes) + 2 * c * Dp * 4
                + K * Dp * in_bytes)

    vmem_budget = 28 * 1024 * 1024
    while tc > 1 and _step_bytes(tc) > vmem_budget:
        tc -= 1
    while BC % tc:                      # keep blocks exact (no partial tiles)
        tc -= 1
    grid = (BC // tc,)

    cost = pl.CostEstimate(
        flops=2 * BC * T * K * Dp,
        transcendentals=0,
        bytes_accessed=(patches.size * in_bytes + w_mat.size * in_bytes
                        + bce.size * 4 + BC * T * Dp * out_bytes),
    )

    out = pl.pallas_call(
        functools.partial(_patch_proj_kernel, tc=tc),
        out_shape=jax.ShapeDtypeStruct((BC, T, Dp), x.dtype),
        grid=grid,
        in_specs=[
            pl.BlockSpec((tc, T, K), lambda i: (i, 0, 0)),     # patches (streamed)
            pl.BlockSpec((K, Dp), lambda i: (0, 0)),           # weights (resident)
            pl.BlockSpec((tc, 1, Dp), lambda i: (i, 0, 0)),    # fused bias + chan-embed
        ],
        out_specs=pl.BlockSpec((tc, T, Dp), lambda i: (i, 0, 0)),
        compiler_params=pltpu.CompilerParams(
            dimension_semantics=("parallel",),
            vmem_limit_bytes=48 * 1024 * 1024,
        ),
        cost_estimate=cost,
    )(patches, w_mat, bce)

    tokens = out[..., :D] if Dp != D else out        # drop lane padding
    tokens = tokens.reshape(B, Cin * T, D)           # == x.flatten(2).transpose(1, 2)
    ortho_proxy_loss = jnp.float32(0.0)              # cfg.{ortho,proxy}_loss_lambda == 0
    return tokens, Cin, ortho_proxy_loss


def _reference(x, conv_w, conv_b, channel_embed_w, cur_channels, patch_size,
               matmul_dtype=jnp.float32):
    """Pure-JAX reference (same bf16 matmul-input rounding, f32 accumulation)."""
    B, Cin, H, W = x.shape
    P = patch_size
    Hp, Wp = H // P, W // P
    D = conv_w.shape[0]
    patches = x.reshape(B, Cin, Hp, P, Wp, P).transpose(0, 1, 2, 4, 3, 5)
    patches = patches.reshape(B, Cin, Hp * Wp, P * P)
    patches = patches.astype(matmul_dtype).astype(jnp.float32)
    w_mat = conv_w.reshape(D, P * P).T.astype(matmul_dtype).astype(jnp.float32)
    y = jnp.einsum('bctk,kd->bctd', patches, w_mat,
                   precision=jax.lax.Precision.HIGHEST) + conv_b
    ce = channel_embed_w[jnp.asarray(cur_channels)]               # (Cin, D)
    y = y + ce[None, :, None, :]
    return y.reshape(B, Cin * Hp * Wp, D)


if __name__ == "__main__":
    # Small, self-consistent shapes: img_size=16, patch_size=4, in_chans=4, embed_dim=32, B=2.
    B, Cin, H, W = 2, 4, 16, 16
    P, D = 4, 32
    cur_channels = jnp.arange(Cin, dtype=jnp.int32)   # mapper[chunk_name] == identity

    key = jax.random.PRNGKey(0)
    kx, kw, kb, kce = jax.random.split(key, 4)
    x = jax.random.normal(kx, (B, Cin, H, W), dtype=jnp.float32)
    # Conv3d(1, D, kernel_size=(1, P, P)) weight / bias, deterministic init.
    fan_in = 1 * 1 * P * P
    bound = 1.0 / (fan_in ** 0.5)
    conv_w = jax.random.uniform(kw, (D, 1, 1, P, P), jnp.float32, -bound, bound)
    conv_b = jax.random.uniform(kb, (D,), jnp.float32, -bound, bound)
    # nn.Embedding(in_chans, embed_dim) with trunc_normal(std=0.02)-like init.
    channel_embed_w = 0.02 * jax.random.normal(kce, (Cin, D), dtype=jnp.float32)

    fn = jax.jit(functools.partial(patch_embed_per_channel, patch_size=P))
    tokens, cin_out, loss = fn(x, conv_w, conv_b, channel_embed_w, cur_channels)
    tokens = jax.block_until_ready(tokens)

    ref = _reference(x, conv_w, conv_b, channel_embed_w, cur_channels, P,
                     matmul_dtype=jnp.bfloat16)
    assert tokens.shape == (B, Cin * (H // P) * (W // P), D), tokens.shape
    assert int(cin_out) == Cin
    assert float(loss) == 0.0
    max_err = float(jnp.max(jnp.abs(tokens - ref)))
    assert jnp.allclose(tokens, ref, rtol=1e-4, atol=1e-4), max_err

    print("KERNEL_OK")
</pallas_src>

<mosaic_0001>
module attributes {stable_mosaic.version = 11 : i64} {
  func.func @_patch_proj_kernel(%arg0: i32, %arg1: memref<8x16x16xbf16, #tpu.memory_space<vmem>>, %arg2: memref<16x128xbf16, #tpu.memory_space<vmem>>, %arg3: memref<8x1x128xf32, #tpu.memory_space<vmem>>, %arg4: memref<8x16x128xf32, #tpu.memory_space<vmem>>) attributes {dimension_semantics = [#tpu.dimension_semantics<parallel>], iteration_bounds = array<i64: 1>, scalar_prefetch = 0 : i64, scratch_operands = 0 : i64, tpu.core_type = #tpu.core_type<tc>, window_params = [{transform_indices = @transform_0, window_bounds = array<i64: 8, 16, 16>}, {pipeline_mode = #tpu.pipeline_mode<synchronous>, transform_indices = @transform_1, window_bounds = array<i64: 16, 128>}, {transform_indices = @transform_2, window_bounds = array<i64: 8, 1, 128>}, {transform_indices = @transform_3, window_bounds = array<i64: 8, 16, 128>}]} {
    %c0 = arith.constant 0 : index
    %c0_0 = arith.constant 0 : index
    %0 = vector.load %arg2[%c0, %c0_0] : memref<16x128xbf16, #tpu.memory_space<vmem>>, vector<16x128xbf16>
    %c0_1 = arith.constant 0 : index
    %c0_2 = arith.constant 0 : index
    %c0_3 = arith.constant 0 : index
    %1 = vector.load %arg1[%c0_1, %c0_2, %c0_3] : memref<8x16x16xbf16, #tpu.memory_space<vmem>>, vector<1x16x16xbf16>
    %2 = vector.shape_cast %1 : vector<1x16x16xbf16> to vector<16x16xbf16>
    %cst = arith.constant dense<0.000000e+00> : vector<16x128xf32>
    %3 = tpu.matmul %2, %0, %cst {dimension_numbers = #tpu.dot_dimension_numbers<[1], [0], [0], [1], [0, 0, 1, 1], [], []>} : vector<16x16xbf16>, vector<16x128xbf16>, vector<16x128xf32> -> vector<16x128xf32>
    %c0_4 = arith.constant 0 : index
    %c0_5 = arith.constant 0 : index
    %c0_6 = arith.constant 0 : index
    %4 = vector.load %arg3[%c0_4, %c0_5, %c0_6] : memref<8x1x128xf32, #tpu.memory_space<vmem>>, vector<1x1x128xf32>
    %5 = vector.shape_cast %4 : vector<1x1x128xf32> to vector<1x128xf32>
    %6 = vector.broadcast %5 : vector<1x128xf32> to vector<16x128xf32>
    %7 = arith.addf %3, %6 : vector<16x128xf32>
    %c0_7 = arith.constant 0 : index
    %c0_8 = arith.constant 0 : index
    %c0_9 = arith.constant 0 : index
    %8 = vector.load %arg4[%c0_7, %c0_8, %c0_9] : memref<8x16x128xf32, #tpu.memory_space<vmem>>, vector<1x16x128xf32>
    %9 = vector.shape_cast %8 : vector<1x16x128xf32> to vector<16x128xf32>
    %10 = vector.shape_cast %7 : vector<16x128xf32> to vector<1x16x128xf32>
    tpu.vector_store %arg4[%c0_7, %c0_8, %c0_9], %10 {strides = array<i32>} : memref<8x16x128xf32, #tpu.memory_space<vmem>>, vector<1x16x128xf32>,
    %c1 = arith.constant 1 : index
    %c0_10 = arith.constant 0 : index
    %c0_11 = arith.constant 0 : index
    %11 = vector.load %arg1[%c1, %c0_10, %c0_11] : memref<8x16x16xbf16, #tpu.memory_space<vmem>>, vector<1x16x16xbf16>
    %12 = vector.shape_cast %11 : vector<1x16x16xbf16> to vector<16x16xbf16>
    %cst_12 = arith.constant dense<0.000000e+00> : vector<16x128xf32>
    %13 = tpu.matmul %12, %0, %cst_12 {dimension_numbers = #tpu.dot_dimension_numbers<[1], [0], [0], [1], [0, 0, 1, 1], [], []>} : vector<16x16xbf16>, vector<16x128xbf16>, vector<16x128xf32> -> vector<16x128xf32>
    %c1_13 = arith.constant 1 : index
    %c0_14 = arith.constant 0 : index
    %c0_15 = arith.constant 0 : index
    %14 = vector.load %arg3[%c1_13, %c0_14, %c0_15] : memref<8x1x128xf32, #tpu.memory_space<vmem>>, vector<1x1x128xf32>
    %15 = vector.shape_cast %14 : vector<1x1x128xf32> to vector<1x128xf32>
    %16 = vector.broadcast %15 : vector<1x128xf32> to vector<16x128xf32>
    %17 = arith.addf %13, %16 : vector<16x128xf32>
    %c1_16 = arith.constant 1 : index
    %c0_17 = arith.constant 0 : index
    %c0_18 = arith.constant 0 : index
    %18 = vector.load %arg4[%c1_16, %c0_17, %c0_18] : memref<8x16x128xf32, #tpu.memory_space<vmem>>, vector<1x16x128xf32>
    %19 = vector.shape_cast %18 : vector<1x16x128xf32> to vector<16x128xf32>
    %20 = vector.shape_cast %17 : vector<16x128xf32> to vector<1x16x128xf32>
    tpu.vector_store %arg4[%c1_16, %c0_17, %c0_18], %20 {strides = array<i32>} : memref<8x16x128xf32, #tpu.memory_space<vmem>>, vector<1x16x128xf32>,
    %c2 = arith.constant 2 : index
    %c0_19 = arith.constant 0 : index
    %c0_20 = arith.constant 0 : index
    %21 = vector.load %arg1[%c2, %c0_19, %c0_20] : memref<8x16x16xbf16, #tpu.memory_space<vmem>>, vector<1x16x16xbf16>
    %22 = vector.shape_cast %21 : vector<1x16x16xbf16> to vector<16x16xbf16>
    %cst_21 = arith.constant dense<0.000000e+00> : vector<16x128xf32>
    %23 = tpu.matmul %22, %0, %cst_21 {dimension_numbers = #tpu.dot_dimension_numbers<[1], [0], [0], [1], [0, 0, 1, 1], [], []>} : vector<16x16xbf16>, vector<16x128xbf16>, vector<16x128xf32> -> vector<16x128xf32>
    %c2_22 = arith.constant 2 : index
    %c0_23 = arith.constant 0 : index
    %c0_24 = arith.constant 0 : index
    %24 = vector.load %arg3[%c2_22, %c0_23, %c0_24] : memref<8x1x128xf32, #tpu.memory_space<vmem>>, vector<1x1x128xf32>
    %25 = vector.shape_cast %24 : vector<1x1x128xf32> to vector<1x128xf32>
    %26 = vector.broadcast %25 : vector<1x128xf32> to vector<16x128xf32>
    %27 = arith.addf %23, %26 : vector<16x128xf32>
    %c2_25 = arith.constant 2 : index
    %c0_26 = arith.constant 0 : index
    %c0_27 = arith.constant 0 : index
    %28 = vector.load %arg4[%c2_25, %c0_26, %c0_27] : memref<8x16x128xf32, #tpu.memory_space<vmem>>, vector<1x16x128xf32>
    %29 = vector.shape_cast %28 : vector<1x16x128xf32> to vector<16x128xf32>
    %30 = vector.shape_cast %27 : vector<16x128xf32> to vector<1x16x128xf32>
    tpu.vector_store %arg4[%c2_25, %c0_26, %c0_27], %30 {strides = array<i32>} : memref<8x16x128xf32, #tpu.memory_space<vmem>>, vector<1x16x128xf32>,
    %c3 = arith.constant 3 : index
    %c0_28 = arith.constant 0 : index
    %c0_29 = arith.constant 0 : index
    %31 = vector.load %arg1[%c3, %c0_28, %c0_29] : memref<8x16x16xbf16, #tpu.memory_space<vmem>>, vector<1x16x16xbf16>
    %32 = vector.shape_cast %31 : vector<1x16x16xbf16> to vector<16x16xbf16>
    %cst_30 = arith.constant dense<0.000000e+00> : vector<16x128xf32>
    %33 = tpu.matmul %32, %0, %cst_30 {dimension_numbers = #tpu.dot_dimension_numbers<[1], [0], [0], [1], [0, 0, 1, 1], [], []>} : vector<16x16xbf16>, vector<16x128xbf16>, vector<16x128xf32> -> vector<16x128xf32>
    %c3_31 = arith.constant 3 : index
    %c0_32 = arith.constant 0 : index
    %c0_33 = arith.constant 0 : index
    %34 = vector.load %arg3[%c3_31, %c0_32, %c0_33] : memref<8x1x128xf32, #tpu.memory_space<vmem>>, vector<1x1x128xf32>
    %35 = vector.shape_cast %34 : vector<1x1x128xf32> to vector<1x128xf32>
    %36 = vector.broadcast %35 : vector<1x128xf32> to vector<16x128xf32>
    %37 = arith.addf %33, %36 : vector<16x128xf32>
    %c3_34 = arith.constant 3 : index
    %c0_35 = arith.constant 0 : index
    %c0_36 = arith.constant 0 : index
    %38 = vector.load %arg4[%c3_34, %c0_35, %c0_36] : memref<8x16x128xf32, #tpu.memory_space<vmem>>, vector<1x16x128xf32>
    %39 = vector.shape_cast %38 : vector<1x16x128xf32> to vector<16x128xf32>
    %40 = vector.shape_cast %37 : vector<16x128xf32> to vector<1x16x128xf32>
    tpu.vector_store %arg4[%c3_34, %c0_35, %c0_36], %40 {strides = array<i32>} : memref<8x16x128xf32, #tpu.memory_space<vmem>>, vector<1x16x128xf32>,
    %c4 = arith.constant 4 : index
    %c0_37 = arith.constant 0 : index
    %c0_38 = arith.constant 0 : index
    %41 = vector.load %arg1[%c4, %c0_37, %c0_38] : memref<8x16x16xbf16, #tpu.memory_space<vmem>>, vector<1x16x16xbf16>
    %42 = vector.shape_cast %41 : vector<1x16x16xbf16> to vector<16x16xbf16>
    %cst_39 = arith.constant dense<0.000000e+00> : vector<16x128xf32>
    %43 = tpu.matmul %42, %0, %cst_39 {dimension_numbers = #tpu.dot_dimension_numbers<[1], [0], [0], [1], [0, 0, 1, 1], [], []>} : vector<16x16xbf16>, vector<16x128xbf16>, vector<16x128xf32> -> vector<16x128xf32>
    %c4_40 = arith.constant 4 : index
    %c0_41 = arith.constant 0 : index
    %c0_42 = arith.constant 0 : index
    %44 = vector.load %arg3[%c4_40, %c0_41, %c0_42] : memref<8x1x128xf32, #tpu.memory_space<vmem>>, vector<1x1x128xf32>
    %45 = vector.shape_cast %44 : vector<1x1x128xf32> to vector<1x128xf32>
    %46 = vector.broadcast %45 : vector<1x128xf32> to vector<16x128xf32>
    %47 = arith.addf %43, %46 : vector<16x128xf32>
    %c4_43 = arith.constant 4 : index
    %c0_44 = arith.constant 0 : index
    %c0_45 = arith.constant 0 : index
    %48 = vector.load %arg4[%c4_43, %c0_44, %c0_45] : memref<8x16x128xf32, #tpu.memory_space<vmem>>, vector<1x16x128xf32>
    %49 = vector.shape_cast %48 : vector<1x16x128xf32> to vector<16x128xf32>
    %50 = vector.shape_cast %47 : vector<16x128xf32> to vector<1x16x128xf32>
    tpu.vector_store %arg4[%c4_43, %c0_44, %c0_45], %50 {strides = array<i32>} : memref<8x16x128xf32, #tpu.memory_space<vmem>>, vector<1x16x128xf32>,
    %c5 = arith.constant 5 : index
    %c0_46 = arith.constant 0 : index
    %c0_47 = arith.constant 0 : index
    %51 = vector.load %arg1[%c5, %c0_46, %c0_47] : memref<8x16x16xbf16, #tpu.memory_space<vmem>>, vector<1x16x16xbf16>
    %52 = vector.shape_cast %51 : vector<1x16x16xbf16> to vector<16x16xbf16>
    %cst_48 = arith.constant dense<0.000000e+00> : vector<16x128xf32>
    %53 = tpu.matmul %52, %0, %cst_48 {dimension_numbers = #tpu.dot_dimension_numbers<[1], [0], [0], [1], [0, 0, 1, 1], [], []>} : vector<16x16xbf16>, vector<16x128xbf16>, vector<16x128xf32> -> vector<16x128xf32>
    %c5_49 = arith.constant 5 : index
    %c0_50 = arith.constant 0 : index
    %c0_51 = arith.constant 0 : index
    %54 = vector.load %arg3[%c5_49, %c0_50, %c0_51] : memref<8x1x128xf32, #tpu.memory_space<vmem>>, vector<1x1x128xf32>
    %55 = vector.shape_cast %54 : vector<1x1x128xf32> to vector<1x128xf32>
    %56 = vector.broadcast %55 : vector<1x128xf32> to vector<16x128xf32>
    %57 = arith.addf %53, %56 : vector<16x128xf32>
    %c5_52 = arith.constant 5 : index
    %c0_53 = arith.constant 0 : index
    %c0_54 = arith.constant 0 : index
    %58 = vector.load %arg4[%c5_52, %c0_53, %c0_54] : memref<8x16x128xf32, #tpu.memory_space<vmem>>, vector<1x16x128xf32>
    %59 = vector.shape_cast %58 : vector<1x16x128xf32> to vector<16x128xf32>
    %60 = vector.shape_cast %57 : vector<16x128xf32> to vector<1x16x128xf32>
    tpu.vector_store %arg4[%c5_52, %c0_53, %c0_54], %60 {strides = array<i32>} : memref<8x16x128xf32, #tpu.memory_space<vmem>>, vector<1x16x128xf32>,
    %c6 = arith.constant 6 : index
    %c0_55 = arith.constant 0 : index
    %c0_56 = arith.constant 0 : index
    %61 = vector.load %arg1[%c6, %c0_55, %c0_56] : memref<8x16x16xbf16, #tpu.memory_space<vmem>>, vector<1x16x16xbf16>
    %62 = vector.shape_cast %61 : vector<1x16x16xbf16> to vector<16x16xbf16>
    %cst_57 = arith.constant dense<0.000000e+00> : vector<16x128xf32>
    %63 = tpu.matmul %62, %0, %cst_57 {dimension_numbers = #tpu.dot_dimension_numbers<[1], [0], [0], [1], [0, 0, 1, 1], [], []>} : vector<16x16xbf16>, vector<16x128xbf16>, vector<16x128xf32> -> vector<16x128xf32>
    %c6_58 = arith.constant 6 : index
    %c0_59 = arith.constant 0 : index
    %c0_60 = arith.constant 0 : index
    %64 = vector.load %arg3[%c6_58, %c0_59, %c0_60] : memref<8x1x128xf32, #tpu.memory_space<vmem>>, vector<1x1x128xf32>
    %65 = vector.shape_cast %64 : vector<1x1x128xf32> to vector<1x128xf32>
    %66 = vector.broadcast %65 : vector<1x128xf32> to vector<16x128xf32>
    %67 = arith.addf %63, %66 : vector<16x128xf32>
    %c6_61 = arith.constant 6 : index
    %c0_62 = arith.constant 0 : index
    %c0_63 = arith.constant 0 : index
    %68 = vector.load %arg4[%c6_61, %c0_62, %c0_63] : memref<8x16x128xf32, #tpu.memory_space<vmem>>, vector<1x16x128xf32>
    %69 = vector.shape_cast %68 : vector<1x16x128xf32> to vector<16x128xf32>
    %70 = vector.shape_cast %67 : vector<16x128xf32> to vector<1x16x128xf32>
    tpu.vector_store %arg4[%c6_61, %c0_62, %c0_63], %70 {strides = array<i32>} : memref<8x16x128xf32, #tpu.memory_space<vmem>>, vector<1x16x128xf32>,
    %c7 = arith.constant 7 : index
    %c0_64 = arith.constant 0 : index
    %c0_65 = arith.constant 0 : index
    %71 = vector.load %arg1[%c7, %c0_64, %c0_65] : memref<8x16x16xbf16, #tpu.memory_space<vmem>>, vector<1x16x16xbf16>
    %72 = vector.shape_cast %71 : vector<1x16x16xbf16> to vector<16x16xbf16>
    %cst_66 = arith.constant dense<0.000000e+00> : vector<16x128xf32>
    %73 = tpu.matmul %72, %0, %cst_66 {dimension_numbers = #tpu.dot_dimension_numbers<[1], [0], [0], [1], [0, 0, 1, 1], [], []>} : vector<16x16xbf16>, vector<16x128xbf16>, vector<16x128xf32> -> vector<16x128xf32>
    %c7_67 = arith.constant 7 : index
    %c0_68 = arith.constant 0 : index
    %c0_69 = arith.constant 0 : index
    %74 = vector.load %arg3[%c7_67, %c0_68, %c0_69] : memref<8x1x128xf32, #tpu.memory_space<vmem>>, vector<1x1x128xf32>
    %75 = vector.shape_cast %74 : vector<1x1x128xf32> to vector<1x128xf32>
    %76 = vector.broadcast %75 : vector<1x128xf32> to vector<16x128xf32>
    %77 = arith.addf %73, %76 : vector<16x128xf32>
    %c7_70 = arith.constant 7 : index
    %c0_71 = arith.constant 0 : index
    %c0_72 = arith.constant 0 : index
    %78 = vector.load %arg4[%c7_70, %c0_71, %c0_72] : memref<8x16x128xf32, #tpu.memory_space<vmem>>, vector<1x16x128xf32>
    %79 = vector.shape_cast %78 : vector<1x16x128xf32> to vector<16x128xf32>
    %80 = vector.shape_cast %77 : vector<16x128xf32> to vector<1x16x128xf32>
    tpu.vector_store %arg4[%c7_70, %c0_71, %c0_72], %80 {strides = array<i32>} : memref<8x16x128xf32, #tpu.memory_space<vmem>>, vector<1x16x128xf32>,
    return
  }
  func.func @transform_0(%arg0: i32) -> (i32, i32, i32) {
    %c0_i32 = arith.constant 0 : i32
    %c0_i32_0 = arith.constant 0 : i32
    %c0_i32_1 = arith.constant 0 : i32
    return %arg0, %c0_i32, %c0_i32_0 : i32, i32, i32
  }
  func.func @transform_1(%arg0: i32) -> (i32, i32) {
    %c0_i32 = arith.constant 0 : i32
    %c0_i32_0 = arith.constant 0 : i32
    %c0_i32_1 = arith.constant 0 : i32
    return %c0_i32, %c0_i32_0 : i32, i32
  }
  func.func @transform_2(%arg0: i32) -> (i32, i32, i32) {
    %c0_i32 = arith.constant 0 : i32
    %c0_i32_0 = arith.constant 0 : i32
    %c0_i32_1 = arith.constant 0 : i32
    return %arg0, %c0_i32, %c0_i32_0 : i32, i32, i32
  }
  func.func @transform_3(%arg0: i32) -> (i32, i32, i32) {
    %c0_i32 = arith.constant 0 : i32
    %c0_i32_0 = arith.constant 0 : i32
    %c0_i32_1 = arith.constant 0 : i32
    return %arg0, %c0_i32, %c0_i32_0 : i32, i32, i32
  }
}

</mosaic_0001>

<bundles_post_ra>
// kernel: patch_embed_per_channel.1
= control target key start
LH: loop header
LB: loop body
LE: loop exit
PB: predicated region body
PF: predicated region fallthrough
CT: control target
= control target key end

     0   :  { %vm34_vm0 = vcmask 130048   ;;  %s512_s1 = inlined_call_operand.vmem [shape: bf16[16,128], index: 1, kind: input, shape index: {}]   ;;  %s513_s0 = inlined_call_operand.vmem [shape: bf16[8,16,16], index: 0, kind: input, shape index: {}]   ;;  %s514_s2 = inlined_call_operand.vmem [shape: f32[8,1,128], index: 2, kind: input, shape index: {}]   ;;  %s515_s3 = inlined_call_operand.vmem [shape: f32[8,16,128], index: 3, kind: output, shape index: {}]  }
   0x1   :  { %v368_v0 = vld [vmem:[%s512_s1] sm:$0xff]  ;;  %v370_v2 = vld [vmem:[%s513_s0 + $0x8] sm:$0xff]  ;;  %v371_v3 = vld [vmem:[%s513_s0 + $0x10] sm:$0xff] }
   0x2   :  { %v369_v1 = vld [vmem:[%s513_s0] sm:$0xff]  ;;  %45 = vmatpush.bf16.msra.mxu0 %v368_v0  ;;  %77 = vmatpush.bf16.msra.mxu1 %v368_v0  ;;  %v372_v4 = vld [vmem:[%s513_s0 + $0x18] sm:$0xff]  ;;  %v374_v6 = vld [vmem:[%s513_s0 + $0x28] sm:$0xff] }
   0x3   :  { %110 = vmatpush.bf16.msra.mxu2 %v368_v0  ;;  %143 = vmatpush.bf16.msra.mxu3 %v368_v0  ;;  %v373_v5 = vld [vmem:[%s513_s0 + $0x20] sm:$0xff]  ;;  %v375_v7 = vld [vmem:[%s513_s0 + $0x30] sm:$0xff]  ;;  %v376_v8 = vld [vmem:[%s513_s0 + $0x38] sm:$0xff] }
   0x4   :  { %v377_v9 = vld [vmem:[%s514_s2] ss:$0 sm:$0xff]  ;;  %v378_v10 = vld [vmem:[%s514_s2 + $0x1] ss:$0 sm:$0xff]  ;;  %v379_v15 = vld [vmem:[%s514_s2 + $0x2] ss:$0 sm:$0xff] }
   0x5   :  { %297 = vmatmul.msk.bf16.vlgmr.msra.gmra.mxu0 %vm34_vm0, %v369_v1  ;;  %305 = vmatmul.msk.bf16.vlgmr.msra.gmra.mxu1 %vm34_vm0, %v370_v2  ;;  %v380_v16 = vld [vmem:[%s514_s2 + $0x3] ss:$0 sm:$0xff]  ;;  %v381_v25 = vld [vmem:[%s514_s2 + $0x4] ss:$0 sm:$0xff]  ;;  %v382_v26 = vld [vmem:[%s514_s2 + $0x5] ss:$0 sm:$0xff] }
   0x6   :  { %315 = vmatmul.msk.bf16.vlgmr.msra.gmra.mxu2 %vm34_vm0, %v371_v3  ;;  %325 = vmatmul.msk.bf16.vlgmr.msra.gmra.mxu3 %vm34_vm0, %v372_v4  ;;  %v383_v35 = vld [vmem:[%s514_s2 + $0x6] ss:$0 sm:$0xff]  ;;  %v384_v36 = vld [vmem:[%s514_s2 + $0x7] ss:$0 sm:$0xff] }
   0x7   :  { %242 = vmatpush.bf16.msrb.mxu2 %v368_v0  ;;  %275 = vmatpush.bf16.msrb.mxu3 %v368_v0 }
   0x8   :  { %176 = vmatpush.bf16.msrb.mxu0 %v368_v0  ;;  %209 = vmatpush.bf16.msrb.mxu1 %v368_v0 }
  0x15   :  { %335 = vmatmul.msk.bf16.vlgmr.msrb.gmra.mxu0 %vm34_vm0, %v373_v5  ;;  %345 = vmatmul.msk.bf16.vlgmr.msrb.gmra.mxu1 %vm34_vm0, %v374_v6 }
  0x16   :  { %355 = vmatmul.msk.bf16.vlgmr.msrb.gmra.mxu2 %vm34_vm0, %v375_v7  ;;  %365 = vmatmul.msk.bf16.vlgmr.msrb.gmra.mxu3 %vm34_vm0, %v376_v8 }
  0x82   :  { %v47_v11 = vpop.f32.mrf.mxu0  ;;  %v79_v12 = vpop.f32.mrf.mxu1 }
  0x83   :  { %v48_v13 = vadd.f32 %v377_v9, %v47_v11  ;;  %v80_v14 = vadd.f32 %v378_v10, %v79_v12 }
  0x85   :  { %52 = vst [vmem:[%s515_s3] sm:$0xff] %v48_v13 }
  0x86   :  { %306 = vst [vmem:[%s515_s3 + $0x10] sm:$0xff] %v80_v14 }
  0x89   :  { %v112_v17 = vpop.f32.mrf.mxu2  ;;  %v145_v18 = vpop.f32.mrf.mxu3 }
  0x8a   :  { %v113_v19 = vadd.f32 %v379_v15, %v112_v17  ;;  %v146_v20 = vadd.f32 %v380_v16, %v145_v18  ;;  %v49_v21 = vpop.f32.mrf.mxu0  ;;  %v81_v22 = vpop.f32.mrf.mxu1 }
  0x8b   :  { %v50_v23 = vadd.f32 %v377_v9, %v49_v21  ;;  %v82_v24 = vadd.f32 %v378_v10, %v81_v22 }
  0x8c   :  { %316 = vst [vmem:[%s515_s3 + $0x20] sm:$0xff] %v113_v19 }
  0x8d   :  { %326 = vst [vmem:[%s515_s3 + $0x30] sm:$0xff] %v146_v20 }
  0x8e   :  { %53 = vst [vmem:[%s515_s3 + $0x8] sm:$0xff] %v50_v23 }
  0x8f   :  { %307 = vst [vmem:[%s515_s3 + $0x18] sm:$0xff] %v82_v24 }
  0x91   :  { %v114_v27 = vpop.f32.mrf.mxu2  ;;  %v147_v28 = vpop.f32.mrf.mxu3 }
  0x92   :  { %v115_v29 = vadd.f32 %v379_v15, %v114_v27  ;;  %v148_v30 = vadd.f32 %v380_v16, %v147_v28  ;;  %v178_v31 = vpop.f32.mrf.mxu0  ;;  %v211_v32 = vpop.f32.mrf.mxu1 }
  0x93   :  { %v179_v33 = vadd.f32 %v381_v25, %v178_v31  ;;  %v212_v34 = vadd.f32 %v382_v26, %v211_v32 }
  0x94   :  { %317 = vst [vmem:[%s515_s3 + $0x28] sm:$0xff] %v115_v29 }
  0x95   :  { %327 = vst [vmem:[%s515_s3 + $0x38] sm:$0xff] %v148_v30 }
  0x96   :  { %336 = vst [vmem:[%s515_s3 + $0x40] sm:$0xff] %v179_v33 }
  0x97   :  { %346 = vst [vmem:[%s515_s3 + $0x50] sm:$0xff] %v212_v34 }
  0x99   :  { %v244_v37 = vpop.f32.mrf.mxu2  ;;  %v277_v38 = vpop.f32.mrf.mxu3 }
  0x9a   :  { %v245_v39 = vadd.f32 %v383_v35, %v244_v37  ;;  %v278_v40 = vadd.f32 %v384_v36, %v277_v38  ;;  %v180_v41 = vpop.f32.mrf.mxu0  ;;  %v213_v42 = vpop.f32.mrf.mxu1 }
  0x9b   :  { %v181_v43 = vadd.f32 %v381_v25, %v180_v41  ;;  %v214_v44 = vadd.f32 %v382_v26, %v213_v42 }
  0x9c   :  { %356 = vst [vmem:[%s515_s3 + $0x60] sm:$0xff] %v245_v39 }
  0x9d   :  { %366 = vst [vmem:[%s515_s3 + $0x70] sm:$0xff] %v278_v40 }
  0x9e   :  { %337 = vst [vmem:[%s515_s3 + $0x48] sm:$0xff] %v181_v43 }
  0x9f   :  { %347 = vst [vmem:[%s515_s3 + $0x58] sm:$0xff] %v214_v44 }
  0xa1   :  { %v246_v45 = vpop.f32.mrf.mxu2  ;;  %v279_v46 = vpop.f32.mrf.mxu3 }
  0xa2   :  { %v247_v47 = vadd.f32 %v383_v35, %v246_v45  ;;  %v280_v48 = vadd.f32 %v384_v36, %v279_v46 }
  0xa4   :  { %357 = vst [vmem:[%s515_s3 + $0x68] sm:$0xff] %v247_v47 }
  0xa5   :  { %367 = vst [vmem:[%s515_s3 + $0x78] sm:$0xff] %v280_v48 }

</bundles_post_ra>
